<compile_context>
chip_gen: v6e
topology: v6e:2x2x1
jax: 0.10.0
libtpu: 0.0.40
codegen_flags: <defaults>
</compile_context>

<pallas_src>
import functools

import jax
import jax.numpy as jnp
from jax.experimental import pallas as pl
from jax.experimental.pallas import tpu as pltpu

_LANES = 1024          # lane-dense width, multiple of 128
_TILE_ROWS = 512       # multiple of 8; 512*1024*4B = 2 MiB per f32 tile


def _hardtanh_kernel(x_ref, o_ref):
    # Elementwise clamp on the VPU.  Python float bounds are weakly typed, so
    # bf16/f32 inputs keep their dtype.
    o_ref[...] = jnp.clip(x_ref[...], -1.0, 1.0)


@functools.partial(jax.jit, static_argnames=("beta",))
def custom_hardtanh(x, beta: float = 0.1):
    """Forward of CustomHardtanhLayer: clamp(x, -1, 1).

    beta is only used by the custom backward pass (straight-through gradient
    scaling with a beta-scaled mask) and has no effect on the forward output.
    """
    # TODO(synk): custom backward (beta-scaled gradient mask) is not
    # implemented; this is the forward pass only.
    del beta

    orig_shape = x.shape
    total = int(x.size)

    # --- wrapper-side layout glue (pure reshape / pad, no compute) ---------
    padded_total = pl.cdiv(total, _LANES) * _LANES
    flat = x.reshape(-1)
    if padded_total != total:
        flat = jnp.pad(flat, (0, padded_total - total))
    rows = padded_total // _LANES
    x2d = flat.reshape(rows, _LANES)

    # Tile rows: whole slab if small, otherwise 512-row tiles.  The final
    # partial tile (if any) is handled by Pallas block padding; the garbage in
    # the padded region is sliced off below.
    tile_rows = min(_TILE_ROWS, rows)
    grid = (pl.cdiv(rows, tile_rows),)

    out2d = pl.pallas_call(
        _hardtanh_kernel,
        out_shape=jax.ShapeDtypeStruct((rows, _LANES), x.dtype),
        grid=grid,
        in_specs=[pl.BlockSpec((tile_rows, _LANES), lambda i: (i, 0))],
        out_specs=pl.BlockSpec((tile_rows, _LANES), lambda i: (i, 0)),
        compiler_params=pltpu.CompilerParams(
            dimension_semantics=("parallel",),
        ),
    )(x2d)

    return out2d.reshape(-1)[:total].reshape(orig_shape)


if __name__ == "__main__":
    key = jax.random.PRNGKey(0)

    # Primary small NCHW input consistent with the module (elementwise op).
    x = jax.random.normal(key, (2, 4, 16, 16), dtype=jnp.float32) * 2.0
    y = jax.block_until_ready(custom_hardtanh(x, beta=0.1))
    ref = jnp.clip(x, -1.0, 1.0)
    assert y.shape == x.shape and y.dtype == x.dtype
    assert jnp.allclose(y, ref), "mismatch vs reference clamp (primary)"

    # Secondary check: ragged shape exercising the pad-and-slice path.
    x2 = jax.random.normal(jax.random.PRNGKey(0), (3, 7, 33, 29),
                           dtype=jnp.float32) * 2.0
    y2 = jax.block_until_ready(custom_hardtanh(x2))
    assert y2.shape == x2.shape and y2.dtype == x2.dtype
    assert jnp.allclose(y2, jnp.clip(x2, -1.0, 1.0)), "mismatch (ragged)"

    # Tertiary check: large enough to exercise the multi-tile pipelined path.
    x3 = jax.random.normal(jax.random.PRNGKey(0), (4, 16, 128, 128),
                           dtype=jnp.float32) * 2.0
    y3 = jax.block_until_ready(custom_hardtanh(x3))
    assert jnp.allclose(y3, jnp.clip(x3, -1.0, 1.0)), "mismatch (multi-tile)"

    print("KERNEL_OK")
</pallas_src>

<mosaic_0001>
module attributes {stable_mosaic.version = 11 : i64} {
  func.func @_hardtanh_kernel(%arg0: i32, %arg1: memref<2x1024xf32, #tpu.memory_space<vmem>>, %arg2: memref<2x1024xf32, #tpu.memory_space<vmem>>) attributes {dimension_semantics = [#tpu.dimension_semantics<parallel>], iteration_bounds = array<i64: 1>, scalar_prefetch = 0 : i64, scratch_operands = 0 : i64, tpu.core_type = #tpu.core_type<tc>, window_params = [{transform_indices = @transform_0, window_bounds = array<i64: 2, 1024>}, {transform_indices = @transform_1, window_bounds = array<i64: 2, 1024>}]} {
    %c0 = arith.constant 0 : index
    %c0_0 = arith.constant 0 : index
    %0 = vector.load %arg1[%c0, %c0_0] : memref<2x1024xf32, #tpu.memory_space<vmem>>, vector<2x1024xf32>
    %cst = arith.constant -1.000000e+00 : f32
    %cst_1 = arith.constant 1.000000e+00 : f32
    %1 = vector.broadcast %cst : f32 to vector<2x1024xf32>
    %2 = arith.maximumf %1, %0 : vector<2x1024xf32>
    %3 = vector.broadcast %cst_1 : f32 to vector<2x1024xf32>
    %4 = arith.minimumf %3, %2 : vector<2x1024xf32>
    %c0_2 = arith.constant 0 : index
    %c0_3 = arith.constant 0 : index
    %5 = vector.load %arg2[%c0_2, %c0_3] : memref<2x1024xf32, #tpu.memory_space<vmem>>, vector<2x1024xf32>
    tpu.vector_store %arg2[%c0_2, %c0_3], %4 {strides = array<i32>} : memref<2x1024xf32, #tpu.memory_space<vmem>>, vector<2x1024xf32>,
    return
  }
  func.func @transform_0(%arg0: i32) -> (i32, i32) {
    %c0_i32 = arith.constant 0 : i32
    %c0_i32_0 = arith.constant 0 : i32
    return %arg0, %c0_i32 : i32, i32
  }
  func.func @transform_1(%arg0: i32) -> (i32, i32) {
    %c0_i32 = arith.constant 0 : i32
    %c0_i32_0 = arith.constant 0 : i32
    return %arg0, %c0_i32 : i32, i32
  }
}

</mosaic_0001>

<bundles_post_ra>
// kernel: custom_hardtanh.1
= control target key start
LH: loop header
LB: loop body
LE: loop exit
PB: predicated region body
PF: predicated region fallthrough
CT: control target
= control target key end

     0   :  { %s44_s0 = inlined_call_operand.vmem [shape: f32[2,1024], index: 0, kind: input, shape index: {}]   ;;  %s45_s1 = inlined_call_operand.vmem [shape: f32[2,1024], index: 1, kind: output, shape index: {}]  }
   0x1   :  { %v8_v0 = vld [vmem:[%s44_s0] sm:$0xff]  ;;  %v9_v1 = vld [vmem:[%s44_s0 + $0x8] sm:$0xff] }
   0x2   :  { %v20_v2 = vclamps-f32 %v8_v0, 1.0  ;;  %v21_v3 = vclamps-f32 %v9_v1, 1.0 }
   0x4   :  { %14 = vst [vmem:[%s45_s1] sm:$0xff] %v20_v2  ;;  %15 = vst [vmem:[%s45_s1 + $0x8] sm:$0xff] %v21_v3 }

</bundles_post_ra>
